<compile_context>
chip_gen: v7x
topology: tpu7x:2x2x1
jax: 0.10.0
libtpu: 0.0.40
codegen_flags: <defaults>
</compile_context>

<pallas_src>
import functools

import jax
import jax.numpy as jnp
from jax.experimental import pallas as pl
from jax.experimental.pallas import tpu as pltpu


# ---------------------------------------------------------------------------
# In-kernel helpers (operate on values already loaded from refs)
# ---------------------------------------------------------------------------
def _conv1d_same(h, w_flat, b, K):
    """'Same'-padded 1-D conv along time as ONE stacked bf16 matmul (f32 accumulation).

    h: (T, Cin) float, w_flat: (K*Cin, Cout) bf16 tap-major, b: (1, Cout) f32.
    Taps are built by zero-padding the time axis and taking K static shifted slices
    (no full-tile boundary select), then stacked along channels so the MXU sees a
    single contraction of depth K*Cin.  Matches nn.Conv1d(kernel_size=K,
    padding=(K-1)//2).
    """
    hf = h.astype(jnp.float32)
    if K == 1:
        return jnp.dot(hf.astype(jnp.bfloat16), w_flat,
                       preferred_element_type=jnp.float32) + b
    T, Cin = hf.shape
    pad = (K - 1) // 2
    zrow = jnp.zeros((pad, Cin), jnp.float32)
    h_pad = jnp.concatenate([zrow, hf, zrow], axis=0)            # (T + 2*pad, Cin)
    stacked = jnp.concatenate([h_pad[dk:dk + T] for dk in range(K)], axis=-1)
    return jnp.dot(stacked.astype(jnp.bfloat16), w_flat,
                   preferred_element_type=jnp.float32) + b


def _layer_norm(h, gamma, beta, eps=1e-5):
    mean = jnp.mean(h, axis=-1, keepdims=True)
    var = jnp.mean((h - mean) ** 2, axis=-1, keepdims=True)
    return (h - mean) * jax.lax.rsqrt(var + eps) * gamma + beta


def _row_linear(h, wl_row, bl):
    """(T, F) x (1, F) -> lane-dense (1, T) via a transposed-RHS dot (no (T,1) store)."""
    return jax.lax.dot_general(wl_row, h, (((1,), (1,)), ((), ())),
                               preferred_element_type=jnp.float32) + bl


def _variance_predictor_body(x, m_row, w1, b1, g1, be1, w2, b2, g2, be2, wl, bl, K):
    """Conv->ReLU->LN->Conv->ReLU->LN->Linear, masked.  Returns lane-dense (1, T)."""
    h = _conv1d_same(x, w1, b1, K)
    h = _layer_norm(jnp.maximum(h, 0.0), g1, be1)
    # dropout_1: identity (deterministic / eval)
    h = _conv1d_same(h, w2, b2, K)
    h = _layer_norm(jnp.maximum(h, 0.0), g2, be2)
    # dropout_2: identity
    out = _row_linear(h, wl, bl)                          # (1, T)
    return jnp.where(m_row > 0, 0.0, out)                 # masked_fill(mask, 0.)


def _full_spec(a):
    """BlockSpec covering the whole (grid-invariant) array."""
    nd = a.ndim
    return pl.BlockSpec(a.shape, lambda *_, nd=nd: (0,) * nd)


# ---------------------------------------------------------------------------
# Kernel 1: VariancePredictor (duration path and pitch path)
# ---------------------------------------------------------------------------
def _var_pred_kernel(x_ref, m_ref, w1, b1, g1, be1, w2, b2, g2, be2, wl, bl,
                     o_ref, *, K):
    o_ref[0] = _variance_predictor_body(
        x_ref[0], m_ref[0], w1[...], b1[...], g1[...], be1[...],
        w2[...], b2[...], g2[...], be2[...], wl[...], bl[...], K)


def variance_predictor(x, mask_row, p, K):
    """x: (B, T, Cin) f32/bf16, mask_row: (B, 1, T) f32 (1.0 = padded).  Returns (B, T)."""
    B, T, Cin = x.shape
    kern = functools.partial(_var_pred_kernel, K=K)
    out = pl.pallas_call(
        kern,
        out_shape=jax.ShapeDtypeStruct((B, 1, T), jnp.float32),
        grid=(B,),
        in_specs=[
            pl.BlockSpec((1, T, Cin), lambda b: (b, 0, 0)),
            pl.BlockSpec((1, 1, T), lambda b: (b, 0, 0)),
            _full_spec(p["w1"]), _full_spec(p["b1"]),
            _full_spec(p["g1"]), _full_spec(p["be1"]),
            _full_spec(p["w2"]), _full_spec(p["b2"]),
            _full_spec(p["g2"]), _full_spec(p["be2"]),
            _full_spec(p["wl"]), _full_spec(p["bl"]),
        ],
        out_specs=pl.BlockSpec((1, 1, T), lambda b: (b, 0, 0)),
        compiler_params=pltpu.CompilerParams(dimension_semantics=("parallel",)),
    )(x, mask_row, p["w1"], p["b1"], p["g1"], p["be1"],
      p["w2"], p["b2"], p["g2"], p["be2"], p["wl"], p["bl"])
    return out[:, 0, :]


# ---------------------------------------------------------------------------
# Kernel 2: AlignmentEncoder projections (speaker conditioning + mel transpose folded in)
# ---------------------------------------------------------------------------
def _aligner_encode_kernel(lin_ref, mel_ref, g_ref,
                           ksw, ksb, qsw, qsb,
                           kw1, kb1, kw2, kb2,
                           qw1, qb1, qw2, qb2, qw3, qb3,
                           kenc_ref, qenc_ref, *, K):
    g = g_ref[0]                                                       # (1, H) f32
    # keys = linguistics + key_spk_proj(g), broadcast over T_text
    k_in = lin_ref[0] + (jnp.dot(g, ksw[...],
                                 preferred_element_type=jnp.float32) + ksb[...])
    # queries: mel is (n_mel, T_mel) in PyTorch layout -> transpose in VMEM (XLU),
    # then + query_spk_proj(g) broadcast over T_mel
    melT = mel_ref[0].T                                                # (T_mel, n_mel)
    q_in = melT + (jnp.dot(g, qsw[...],
                           preferred_element_type=jnp.float32) + qsb[...])
    # key_proj: Conv(H,2H,k3) -> ReLU -> Conv(2H,F,k1)
    kh = jnp.maximum(_conv1d_same(k_in, kw1[...], kb1[...], K), 0.0)
    kenc_ref[0] = _conv1d_same(kh, kw2[...], kb2[...], 1)
    # query_proj: Conv(n_mel,2n_mel,k3)->ReLU->Conv(2n_mel,n_mel,k1)->ReLU->Conv(n_mel,F,k1)
    qh = jnp.maximum(_conv1d_same(q_in, qw1[...], qb1[...], K), 0.0)
    qh = jnp.maximum(_conv1d_same(qh, qw2[...], qb2[...], 1), 0.0)
    qenc_ref[0] = _conv1d_same(qh, qw3[...], qb3[...], 1)


def aligner_encode(linguistics, mel, g3, p, K):
    B, T_text, H = linguistics.shape
    n_mel, T_mel = mel.shape[1], mel.shape[2]
    F = p["kw2"].shape[1]
    kern = functools.partial(_aligner_encode_kernel, K=K)
    return pl.pallas_call(
        kern,
        out_shape=(jax.ShapeDtypeStruct((B, T_text, F), jnp.float32),
                   jax.ShapeDtypeStruct((B, T_mel, F), jnp.float32)),
        grid=(B,),
        in_specs=[
            pl.BlockSpec((1, T_text, H), lambda b: (b, 0, 0)),
            pl.BlockSpec((1, n_mel, T_mel), lambda b: (b, 0, 0)),
            pl.BlockSpec((1, 1, H), lambda b: (b, 0, 0)),
            _full_spec(p["ksw"]), _full_spec(p["ksb"]),
            _full_spec(p["qsw"]), _full_spec(p["qsb"]),
            _full_spec(p["kw1"]), _full_spec(p["kb1"]),
            _full_spec(p["kw2"]), _full_spec(p["kb2"]),
            _full_spec(p["qw1"]), _full_spec(p["qb1"]),
            _full_spec(p["qw2"]), _full_spec(p["qb2"]),
            _full_spec(p["qw3"]), _full_spec(p["qb3"]),
        ],
        out_specs=(pl.BlockSpec((1, T_text, F), lambda b: (b, 0, 0)),
                   pl.BlockSpec((1, T_mel, F), lambda b: (b, 0, 0))),
        compiler_params=pltpu.CompilerParams(dimension_semantics=("parallel",)),
    )(linguistics, mel, g3,
      p["ksw"], p["ksb"], p["qsw"], p["qsb"],
      p["kw1"], p["kb1"], p["kw2"], p["kb2"],
      p["qw1"], p["qb1"], p["qw2"], p["qb2"], p["qw3"], p["qb3"])


# ---------------------------------------------------------------------------
# Kernel 3: distance + log_softmax + prior + masked softmax + argmax, tiled over T_mel
# ---------------------------------------------------------------------------
def _attn_dist_kernel(q_ref, k_ref, m_ref, pr_ref, attn_ref, logp_ref, idx_ref,
                      *, temperature):
    q = q_ref[0]                                            # (TM, F) f32
    k = k_ref[0]                                            # (Tt, F) f32
    Tt, F = k.shape

    # |k|^2 as a lane-dense (1, Tt) row via a 1-row f32 matmul (no transpose, full f32).
    kn_row = jax.lax.dot_general(jnp.ones((1, F), jnp.float32), k * k,
                                 (((1,), (1,)), ((), ())),
                                 preferred_element_type=jnp.float32)   # (1, Tt)
    # Cross term: depth-F bf16 matmul (aligned), f32 accumulation.
    s = jax.lax.dot_general(q.astype(jnp.bfloat16), k.astype(jnp.bfloat16),
                            (((1,), (1,)), ((), ())),
                            preferred_element_type=jnp.float32)        # (TM, Tt)
    # -temperature * |q - k|^2; the per-row |q|^2 term is omitted because it is
    # constant along the softmax axis and cancels exactly in log_softmax and softmax.
    attn0 = temperature * (2.0 * s - kn_row)

    # prior arrives in PyTorch layout (Tt, TM); transpose in VMEM (XLU).
    prior = pr_ref[0].T + 1e-8                              # (TM, Tt)
    log_prior = jnp.log(prior)

    # log_softmax over T_text + log(prior + 1e-8)  -> attn_logprob (pre-mask)
    mx = jnp.max(attn0, axis=-1, keepdims=True)
    e = jnp.exp(attn0 - mx)
    lse = mx + jnp.log(jnp.sum(e, axis=-1, keepdims=True))
    logp_ref[0] = attn0 - lse + log_prior

    # masked softmax over T_text, reusing the exponentials above:
    #   softmax(log_softmax(attn0)+log(prior), masked) == normalize(e * prior * keep)
    keep = (m_ref[0] <= 0).astype(jnp.float32)              # (1, Tt), 1.0 where valid
    unnorm = e * prior * keep
    denom = jnp.sum(unnorm, axis=-1, keepdims=True)
    w = unnorm * pl.reciprocal(denom + 1e-30, approx=True)
    attn_ref[0] = w.astype(jnp.bfloat16)

    # per-mel-frame argmax over T_text (first occurrence), on the tile already in VMEM
    cols = jax.lax.broadcasted_iota(jnp.int32, unnorm.shape, 1)
    row_max = jnp.max(unnorm, axis=-1, keepdims=True)
    idx_ref[0] = jnp.min(jnp.where(unnorm >= row_max, cols, Tt),
                         axis=-1, keepdims=True)            # (TM, 1) int32


def aligner_attention(q_enc, k_enc, text_mask_row, attn_prior, temperature,
                      tm_tile=256):
    """Returns attn (bf16), attn_logprob (f32) with shape (B, T_mel, T_text)
    (softmax over T_text) and per-frame argmax indices (B, T_mel, 1) int32."""
    B, T_mel, F = q_enc.shape
    T_text = k_enc.shape[1]
    TM = min(tm_tile, T_mel)
    kern = functools.partial(_attn_dist_kernel, temperature=float(temperature))
    return pl.pallas_call(
        kern,
        out_shape=(jax.ShapeDtypeStruct((B, T_mel, T_text), jnp.bfloat16),
                   jax.ShapeDtypeStruct((B, T_mel, T_text), jnp.float32),
                   jax.ShapeDtypeStruct((B, T_mel, 1), jnp.int32)),
        grid=(B, pl.cdiv(T_mel, TM)),
        in_specs=[
            pl.BlockSpec((1, TM, F), lambda b, t: (b, t, 0)),
            pl.BlockSpec((1, T_text, F), lambda b, t: (b, 0, 0)),
            pl.BlockSpec((1, 1, T_text), lambda b, t: (b, 0, 0)),
            pl.BlockSpec((1, T_text, TM), lambda b, t: (b, 0, t)),
        ],
        out_specs=(pl.BlockSpec((1, TM, T_text), lambda b, t: (b, t, 0)),
                   pl.BlockSpec((1, TM, T_text), lambda b, t: (b, t, 0)),
                   pl.BlockSpec((1, TM, 1), lambda b, t: (b, t, 0))),
        compiler_params=pltpu.CompilerParams(
            dimension_semantics=("parallel", "parallel")),
    )(q_enc, k_enc, text_mask_row, attn_prior)


# ---------------------------------------------------------------------------
# Kernel 4: soft expansion bmm + split `proj` (W_ling / W_pitch), tiled over T_mel
# ---------------------------------------------------------------------------
def _expand_proj_kernel(a_ref, x_ref, wl, bl, wp, bp, ling_ref, pf_ref):
    # bmm(attn_s, linguistics), bf16 MXU operands with f32 accumulation
    ex = jnp.dot(a_ref[0], x_ref[0], preferred_element_type=jnp.float32)  # (TM, H)
    exb = ex.astype(jnp.bfloat16)
    ling_ref[0] = jnp.dot(exb, wl[...], preferred_element_type=jnp.float32) + bl[...]
    pf_ref[0] = (jnp.dot(exb, wp[...],
                         preferred_element_type=jnp.float32) + bp[...]
                 ).astype(jnp.bfloat16)


def expand_proj(attn_bf16, ling_bf16, params, tm_tile=256):
    B, T_mel, T_text = attn_bf16.shape
    H = ling_bf16.shape[2]
    TM = min(tm_tile, T_mel)
    ling_out, pitch_feat = pl.pallas_call(
        _expand_proj_kernel,
        out_shape=(jax.ShapeDtypeStruct((B, T_mel, H), jnp.float32),
                   jax.ShapeDtypeStruct((B, T_mel, H), jnp.bfloat16)),
        grid=(B, pl.cdiv(T_mel, TM)),
        in_specs=[
            pl.BlockSpec((1, TM, T_text), lambda b, t: (b, t, 0)),
            pl.BlockSpec((1, T_text, H), lambda b, t: (b, 0, 0)),
            _full_spec(params["proj_w_ling"]), _full_spec(params["proj_b_ling"]),
            _full_spec(params["proj_w_pitch"]), _full_spec(params["proj_b_pitch"]),
        ],
        out_specs=(pl.BlockSpec((1, TM, H), lambda b, t: (b, t, 0)),
                   pl.BlockSpec((1, TM, H), lambda b, t: (b, t, 0))),
        compiler_params=pltpu.CompilerParams(
            dimension_semantics=("parallel", "parallel")),
    )(attn_bf16, ling_bf16,
      params["proj_w_ling"], params["proj_b_ling"],
      params["proj_w_pitch"], params["proj_b_pitch"])
    return ling_out, pitch_feat


# ---------------------------------------------------------------------------
# Kernel 5: pitch bucketize + embedding lookup (one-hot bf16 matmul) + speaker add
# ---------------------------------------------------------------------------
def _pitch_embed_kernel(t_ref, g_ref, bins_ref, tab_ref, o_ref):
    tv = t_ref[0]                                               # (T_mel, 1) f32
    # torch.bucketize(right=False): idx = #{boundaries strictly < v}
    idx = jnp.sum((tv > bins_ref[...]).astype(jnp.int32), axis=-1, keepdims=True)
    iota = jax.lax.broadcasted_iota(jnp.int32, (tv.shape[0], tab_ref.shape[0]), 1)
    onehot = (idx == iota).astype(jnp.bfloat16)                 # (T_mel, n_bins)
    emb = jnp.dot(onehot, tab_ref[...], preferred_element_type=jnp.float32)
    o_ref[0] = emb + g_ref[0]                                   # + g.unsqueeze(1)


def pitch_embed(pitch_col, g3, bins, table):
    B, T_mel = pitch_col.shape[0], pitch_col.shape[1]
    n_bins, H = table.shape
    return pl.pallas_call(
        _pitch_embed_kernel,
        out_shape=jax.ShapeDtypeStruct((B, T_mel, H), jnp.float32),
        grid=(B,),
        in_specs=[
            pl.BlockSpec((1, T_mel, 1), lambda b: (b, 0, 0)),
            pl.BlockSpec((1, 1, H), lambda b: (b, 0, 0)),
            _full_spec(bins), _full_spec(table),
        ],
        out_specs=pl.BlockSpec((1, T_mel, H), lambda b: (b, 0, 0)),
        compiler_params=pltpu.CompilerParams(dimension_semantics=("parallel",)),
    )(pitch_col, g3, bins, table)


# ---------------------------------------------------------------------------
# Parameter construction (deterministic, synthetic).  Conv / projection weights are
# stored pre-flattened tap-major as (K*Cin, Cout) in bf16 (MXU operands); biases,
# LayerNorm params, final Linear rows and the speaker linears stay f32.
# ---------------------------------------------------------------------------
def init_params(key, H, F, K, n_mel, n_bins):
    keys = iter(jax.random.split(key, 64))

    def w(shape, scale=0.1, dtype=jnp.bfloat16):
        return (scale * jax.random.normal(next(keys), shape)).astype(dtype)

    def vp_params(cin):
        return dict(
            w1=w((K * cin, F)), b1=jnp.zeros((1, F), jnp.float32),
            g1=jnp.ones((1, F), jnp.float32), be1=jnp.zeros((1, F), jnp.float32),
            w2=w((K * F, F)), b2=jnp.zeros((1, F), jnp.float32),
            g2=jnp.ones((1, F), jnp.float32), be2=jnp.zeros((1, F), jnp.float32),
            wl=w((1, F), dtype=jnp.float32), bl=jnp.zeros((1, 1), jnp.float32),
        )

    return dict(
        dur_pred=vp_params(H),
        pitch_pred=vp_params(H),
        aligner=dict(
            ksw=w((H, H), dtype=jnp.float32), ksb=jnp.zeros((1, H), jnp.float32),
            qsw=w((H, n_mel), dtype=jnp.float32), qsb=jnp.zeros((1, n_mel), jnp.float32),
            kw1=w((K * H, 2 * H)), kb1=jnp.zeros((1, 2 * H), jnp.float32),
            kw2=w((2 * H, F)), kb2=jnp.zeros((1, F), jnp.float32),
            qw1=w((K * n_mel, 2 * n_mel)), qb1=jnp.zeros((1, 2 * n_mel), jnp.float32),
            qw2=w((2 * n_mel, n_mel)), qb2=jnp.zeros((1, n_mel), jnp.float32),
            qw3=w((n_mel, F)), qb3=jnp.zeros((1, F), jnp.float32),
        ),
        # proj: Linear(H, 2H) split into the linguistics half and the pitch-feature half
        proj_w_ling=w((H, H)), proj_b_ling=jnp.zeros((1, H), jnp.float32),
        proj_w_pitch=w((H, H)), proj_b_pitch=jnp.zeros((1, H), jnp.float32),
        pitch_bins=jnp.linspace(-1.5, 1.5, n_bins - 1,
                                dtype=jnp.float32).reshape(1, n_bins - 1),
        pitch_emb=w((n_bins, H), 0.2),
    )


# ---------------------------------------------------------------------------
# Full forward (training branch, step < binarization_start_steps)
# ---------------------------------------------------------------------------
def variance_adaptor_forward(params, linguistics, src_len, src_mask, mel, mel_len,
                             mel_mask, max_mel_len, pitch_target, attn_prior, g,
                             p_control=1.0, d_control=1.0, step=0,
                             binarization_start_steps=1000, temperature=5e-4, K=3,
                             tm_tile=256):
    B, T_text, H = linguistics.shape
    T_mel = mel.shape[2]

    src_mask_row = src_mask.astype(jnp.float32)[:, None, :]     # (B, 1, T_text)
    mel_mask_row = mel_mask.astype(jnp.float32)[:, None, :]     # (B, 1, T_mel)
    g3 = g[:, None, :]                                          # (B, 1, H)

    # 1. duration predictor
    log_duration_prediction = variance_predictor(
        linguistics, src_mask_row, params["dur_pred"], K)       # (B, T_text)

    # 2. aligner key/query conv stacks (speaker conditioning + mel transpose in-kernel)
    k_enc, q_enc = aligner_encode(linguistics, mel, g3, params["aligner"], K)

    # 3. distance + log_softmax + prior + masked softmax + argmax (tiled over T_mel);
    #    prior transposed in-kernel, attn emitted directly as bf16
    attn3, logp3, idx3 = aligner_attention(
        q_enc, k_enc, src_mask_row, attn_prior, temperature, tm_tile)
    attn_s = attn3[:, None]                                     # (B, 1, T_mel, T_text) bf16
    attn_logprob = logp3[:, None]

    # 4. hard attention / durations
    # TODO(synk): b_mas monotonic alignment search (sequential numpy DP) has no clean
    # Pallas equivalent; approximated with the per-mel-frame argmax emitted by kernel 3.
    hard_idx = idx3[..., 0]                                     # (B, T_mel)
    valid_mel = (~mel_mask).astype(jnp.float32)                 # (B, T_mel)
    attn_h0 = jax.nn.one_hot(hard_idx, T_text, dtype=jnp.float32) * valid_mel[..., None]
    attn_h = attn_h0[:, None]
    duration_rounded = jnp.sum(attn_h0, axis=1)                 # (B, T_text), mel-masked

    # 5. step < binarization_start_steps: soft expansion fused with the split `proj`
    #    (bf16 MXU operands, tiled over T_mel)
    assert step < binarization_start_steps
    ling_out, pitch_features = expand_proj(
        attn3, linguistics.astype(jnp.bfloat16), params, tm_tile)

    # 6. pitch predictor on pitch_features (bf16 in, f32 out), mel-masked
    pitch_prediction = variance_predictor(
        pitch_features, mel_mask_row, params["pitch_pred"], K)  # (B, T_mel)

    # 7. pitch embedding from target (bucketize + one-hot matmul) + speaker add
    pitch_embedding = pitch_embed(pitch_target[..., None], g3,
                                  params["pitch_bins"], params["pitch_emb"])

    return (pitch_embedding, ling_out, pitch_prediction, log_duration_prediction,
            duration_rounded, mel_len, mel_mask, attn_h, attn_s, attn_logprob)


# ---------------------------------------------------------------------------
if __name__ == "__main__":
    key = jax.random.PRNGKey(0)
    B, T_text, T_mel = 2, 8, 16
    H, F, K, n_mel, n_bins = 32, 32, 3, 16, 8

    k_par, k_lin, k_mel, k_pit, k_pri, k_g = jax.random.split(key, 6)
    params = init_params(k_par, H, F, K, n_mel, n_bins)

    linguistics = 0.1 * jax.random.normal(k_lin, (B, T_text, H), jnp.float32)
    mel = 0.1 * jax.random.normal(k_mel, (B, n_mel, T_mel), jnp.float32)
    pitch_target = jax.random.normal(k_pit, (B, T_mel), jnp.float32)
    attn_prior = jax.random.uniform(k_pri, (B, T_text, T_mel), jnp.float32, 0.1, 1.0)
    g = 0.1 * jax.random.normal(k_g, (B, H), jnp.float32)

    src_len = jnp.array([8, 6], jnp.int32)
    mel_len = jnp.array([16, 12], jnp.int32)
    src_mask = jnp.arange(T_text)[None, :] >= src_len[:, None]   # True = padded
    mel_mask = jnp.arange(T_mel)[None, :] >= mel_len[:, None]

    outputs = variance_adaptor_forward(
        params, linguistics, src_len, src_mask, mel, mel_len, mel_mask,
        max_mel_len=T_mel, pitch_target=pitch_target, attn_prior=attn_prior,
        g=g, p_control=1.0, d_control=1.0, step=0)

    jax.block_until_ready(outputs)
    print("KERNEL_OK")
</pallas_src>

<mosaic_0001>
module attributes {stable_mosaic.version = 11 : i64} {
  func.func @_var_pred_kernel(%arg0: i32, %arg1: memref<1x8x32xf32, #tpu.memory_space<vmem>>, %arg2: memref<1x1x8xf32, #tpu.memory_space<vmem>>, %arg3: memref<96x32xbf16, #tpu.memory_space<vmem>>, %arg4: memref<1x32xf32, #tpu.memory_space<vmem>>, %arg5: memref<1x32xf32, #tpu.memory_space<vmem>>, %arg6: memref<1x32xf32, #tpu.memory_space<vmem>>, %arg7: memref<96x32xbf16, #tpu.memory_space<vmem>>, %arg8: memref<1x32xf32, #tpu.memory_space<vmem>>, %arg9: memref<1x32xf32, #tpu.memory_space<vmem>>, %arg10: memref<1x32xf32, #tpu.memory_space<vmem>>, %arg11: memref<1x32xf32, #tpu.memory_space<vmem>>, %arg12: memref<1x1xf32, #tpu.memory_space<vmem>>, %arg13: memref<1x1x8xf32, #tpu.memory_space<vmem>>) attributes {dimension_semantics = [#tpu.dimension_semantics<parallel>], iteration_bounds = array<i64: 2>, scalar_prefetch = 0 : i64, scratch_operands = 0 : i64, tpu.core_type = #tpu.core_type<tc>, window_params = [{transform_indices = @transform_0, window_bounds = array<i64: 1, 8, 32>}, {transform_indices = @transform_1, window_bounds = array<i64: 1, 1, 8>}, {pipeline_mode = #tpu.pipeline_mode<synchronous>, transform_indices = @transform_2, window_bounds = array<i64: 96, 32>}, {pipeline_mode = #tpu.pipeline_mode<synchronous>, transform_indices = @transform_3, window_bounds = array<i64: 1, 32>}, {pipeline_mode = #tpu.pipeline_mode<synchronous>, transform_indices = @transform_4, window_bounds = array<i64: 1, 32>}, {pipeline_mode = #tpu.pipeline_mode<synchronous>, transform_indices = @transform_5, window_bounds = array<i64: 1, 32>}, {pipeline_mode = #tpu.pipeline_mode<synchronous>, transform_indices = @transform_6, window_bounds = array<i64: 96, 32>}, {pipeline_mode = #tpu.pipeline_mode<synchronous>, transform_indices = @transform_7, window_bounds = array<i64: 1, 32>}, {pipeline_mode = #tpu.pipeline_mode<synchronous>, transform_indices = @transform_8, window_bounds = array<i64: 1, 32>}, {pipeline_mode = #tpu.pipeline_mode<synchronous>, transform_indices = @transform_9, window_bounds = array<i64: 1, 32>}, {pipeline_mode = #tpu.pipeline_mode<synchronous>, transform_indices = @transform_10, window_bounds = array<i64: 1, 32>}, {pipeline_mode = #tpu.pipeline_mode<synchronous>, transform_indices = @transform_11, window_bounds = array<i64: 1, 1>}, {transform_indices = @transform_12, window_bounds = array<i64: 1, 1, 8>}]} {
    %c0 = arith.constant 0 : index
    %c0_0 = arith.constant 0 : index
    %c0_1 = arith.constant 0 : index
    %0 = vector.load %arg1[%c0, %c0_0, %c0_1] : memref<1x8x32xf32, #tpu.memory_space<vmem>>, vector<1x8x32xf32>
    %1 = vector.shape_cast %0 : vector<1x8x32xf32> to vector<8x32xf32>
    %c0_2 = arith.constant 0 : index
    %c0_3 = arith.constant 0 : index
    %c0_4 = arith.constant 0 : index
    %2 = vector.load %arg2[%c0_2, %c0_3, %c0_4] : memref<1x1x8xf32, #tpu.memory_space<vmem>>, vector<1x1x8xf32>
    %3 = vector.shape_cast %2 : vector<1x1x8xf32> to vector<1x8xf32>
    %c0_5 = arith.constant 0 : index
    %c0_6 = arith.constant 0 : index
    %4 = vector.load %arg3[%c0_5, %c0_6] : memref<96x32xbf16, #tpu.memory_space<vmem>>, vector<96x32xbf16>
    %c0_7 = arith.constant 0 : index
    %c0_8 = arith.constant 0 : index
    %5 = vector.load %arg4[%c0_7, %c0_8] : memref<1x32xf32, #tpu.memory_space<vmem>>, vector<1x32xf32>
    %c0_9 = arith.constant 0 : index
    %c0_10 = arith.constant 0 : index
    %6 = vector.load %arg5[%c0_9, %c0_10] : memref<1x32xf32, #tpu.memory_space<vmem>>, vector<1x32xf32>
    %c0_11 = arith.constant 0 : index
    %c0_12 = arith.constant 0 : index
    %7 = vector.load %arg6[%c0_11, %c0_12] : memref<1x32xf32, #tpu.memory_space<vmem>>, vector<1x32xf32>
    %c0_13 = arith.constant 0 : index
    %c0_14 = arith.constant 0 : index
    %8 = vector.load %arg7[%c0_13, %c0_14] : memref<96x32xbf16, #tpu.memory_space<vmem>>, vector<96x32xbf16>
    %c0_15 = arith.constant 0 : index
    %c0_16 = arith.constant 0 : index
    %9 = vector.load %arg8[%c0_15, %c0_16] : memref<1x32xf32, #tpu.memory_space<vmem>>, vector<1x32xf32>
    %c0_17 = arith.constant 0 : index
    %c0_18 = arith.constant 0 : index
    %10 = vector.load %arg9[%c0_17, %c0_18] : memref<1x32xf32, #tpu.memory_space<vmem>>, vector<1x32xf32>
    %c0_19 = arith.constant 0 : index
    %c0_20 = arith.constant 0 : index
    %11 = vector.load %arg10[%c0_19, %c0_20] : memref<1x32xf32, #tpu.memory_space<vmem>>, vector<1x32xf32>
    %c0_21 = arith.constant 0 : index
    %c0_22 = arith.constant 0 : index
    %12 = vector.load %arg11[%c0_21, %c0_22] : memref<1x32xf32, #tpu.memory_space<vmem>>, vector<1x32xf32>
    %c0_23 = arith.constant 0 : index
    %c0_24 = arith.constant 0 : index
    %13 = vector.load %arg12[%c0_23, %c0_24] : memref<1x1xf32, #tpu.memory_space<vmem>>, vector<1x1xf32>
    %cst = arith.constant 0.000000e+00 : f32
    %14 = vector.broadcast %cst : f32 to vector<1x32xf32>
    %15 = tpu.concatenate %14, %1, %14 in 0 : vector<1x32xf32>, vector<8x32xf32>, vector<1x32xf32> -> vector<10x32xf32>
    %16 = vector.extract_strided_slice %15 {offsets = [0, 0], sizes = [8, 32], strides = [1, 1]} : vector<10x32xf32> to vector<8x32xf32>
    %17 = vector.extract_strided_slice %15 {offsets = [1, 0], sizes = [8, 32], strides = [1, 1]} : vector<10x32xf32> to vector<8x32xf32>
    %18 = vector.extract_strided_slice %15 {offsets = [2, 0], sizes = [8, 32], strides = [1, 1]} : vector<10x32xf32> to vector<8x32xf32>
    %19 = tpu.concatenate %16, %17, %18 in 1 : vector<8x32xf32>, vector<8x32xf32>, vector<8x32xf32> -> vector<8x96xf32>
    %20 = arith.truncf %19 : vector<8x96xf32> to vector<8x96xbf16>
    %cst_25 = arith.constant dense<0.000000e+00> : vector<8x32xf32>
    %21 = tpu.matmul %20, %4, %cst_25 {dimension_numbers = #tpu.dot_dimension_numbers<[1], [0], [0], [1], [0, 0, 1, 1], [], []>} : vector<8x96xbf16>, vector<96x32xbf16>, vector<8x32xf32> -> vector<8x32xf32>
    %22 = vector.broadcast %5 : vector<1x32xf32> to vector<8x32xf32>
    %23 = arith.addf %21, %22 : vector<8x32xf32>
    %cst_26 = arith.constant 0.000000e+00 : f32
    %24 = vector.broadcast %cst_26 : f32 to vector<8x32xf32>
    %25 = arith.maximumf %23, %24 : vector<8x32xf32>
    %cst_27 = arith.constant dense<0.000000e+00> : vector<8xf32>
    %26 = vector.multi_reduction <add>, %25, %cst_27 [1] : vector<8x32xf32> to vector<8xf32>
    %27 = vector.shape_cast %26 : vector<8xf32> to vector<8x1xf32>
    %cst_28 = arith.constant 3.200000e+01 : f32
    %28 = vector.broadcast %cst_28 : f32 to vector<8x1xf32>
    %29 = arith.divf %27, %28 : vector<8x1xf32>
    %30 = vector.broadcast %29 : vector<8x1xf32> to vector<8x32xf32>
    %31 = arith.subf %25, %30 : vector<8x32xf32>
    %32 = arith.mulf %31, %31 : vector<8x32xf32>
    %cst_29 = arith.constant dense<0.000000e+00> : vector<8xf32>
    %33 = vector.multi_reduction <add>, %32, %cst_29 [1] : vector<8x32xf32> to vector<8xf32>
    %34 = vector.shape_cast %33 : vector<8xf32> to vector<8x1xf32>
    %cst_30 = arith.constant 3.200000e+01 : f32
    %35 = vector.broadcast %cst_30 : f32 to vector<8x1xf32>
    %36 = arith.divf %34, %35 : vector<8x1xf32>
    %37 = vector.broadcast %29 : vector<8x1xf32> to vector<8x32xf32>
    %38 = arith.subf %25, %37 : vector<8x32xf32>
    %cst_31 = arith.constant 9.99999974E-6 : f32
    %39 = vector.broadcast %cst_31 : f32 to vector<8x1xf32>
    %40 = arith.addf %36, %39 : vector<8x1xf32>
    %41 = math.rsqrt %40 : vector<8x1xf32>
    %42 = vector.broadcast %41 : vector<8x1xf32> to vector<8x32xf32>
    %43 = arith.mulf %38, %42 : vector<8x32xf32>
    %44 = vector.broadcast %6 : vector<1x32xf32> to vector<8x32xf32>
    %45 = arith.mulf %43, %44 : vector<8x32xf32>
    %46 = vector.broadcast %7 : vector<1x32xf32> to vector<8x32xf32>
    %47 = arith.addf %45, %46 : vector<8x32xf32>
    %cst_32 = arith.constant 0.000000e+00 : f32
    %48 = vector.broadcast %cst_32 : f32 to vector<1x32xf32>
    %49 = tpu.concatenate %48, %47, %48 in 0 : vector<1x32xf32>, vector<8x32xf32>, vector<1x32xf32> -> vector<10x32xf32>
    %50 = vector.extract_strided_slice %49 {offsets = [0, 0], sizes = [8, 32], strides = [1, 1]} : vector<10x32xf32> to vector<8x32xf32>
    %51 = vector.extract_strided_slice %49 {offsets = [1, 0], sizes = [8, 32], strides = [1, 1]} : vector<10x32xf32> to vector<8x32xf32>
    %52 = vector.extract_strided_slice %49 {offsets = [2, 0], sizes = [8, 32], strides = [1, 1]} : vector<10x32xf32> to vector<8x32xf32>
    %53 = tpu.concatenate %50, %51, %52 in 1 : vector<8x32xf32>, vector<8x32xf32>, vector<8x32xf32> -> vector<8x96xf32>
    %54 = arith.truncf %53 : vector<8x96xf32> to vector<8x96xbf16>
    %cst_33 = arith.constant dense<0.000000e+00> : vector<8x32xf32>
    %55 = tpu.matmul %54, %8, %cst_33 {dimension_numbers = #tpu.dot_dimension_numbers<[1], [0], [0], [1], [0, 0, 1, 1], [], []>} : vector<8x96xbf16>, vector<96x32xbf16>, vector<8x32xf32> -> vector<8x32xf32>
    %56 = vector.broadcast %9 : vector<1x32xf32> to vector<8x32xf32>
    %57 = arith.addf %55, %56 : vector<8x32xf32>
    %cst_34 = arith.constant 0.000000e+00 : f32
    %58 = vector.broadcast %cst_34 : f32 to vector<8x32xf32>
    %59 = arith.maximumf %57, %58 : vector<8x32xf32>
    %cst_35 = arith.constant dense<0.000000e+00> : vector<8xf32>
    %60 = vector.multi_reduction <add>, %59, %cst_35 [1] : vector<8x32xf32> to vector<8xf32>
    %61 = vector.shape_cast %60 : vector<8xf32> to vector<8x1xf32>
    %cst_36 = arith.constant 3.200000e+01 : f32
    %62 = vector.broadcast %cst_36 : f32 to vector<8x1xf32>
    %63 = arith.divf %61, %62 : vector<8x1xf32>
    %64 = vector.broadcast %63 : vector<8x1xf32> to vector<8x32xf32>
    %65 = arith.subf %59, %64 : vector<8x32xf32>
    %66 = arith.mulf %65, %65 : vector<8x32xf32>
    %cst_37 = arith.constant dense<0.000000e+00> : vector<8xf32>
    %67 = vector.multi_reduction <add>, %66, %cst_37 [1] : vector<8x32xf32> to vector<8xf32>
    %68 = vector.shape_cast %67 : vector<8xf32> to vector<8x1xf32>
    %cst_38 = arith.constant 3.200000e+01 : f32
    %69 = vector.broadcast %cst_38 : f32 to vector<8x1xf32>
    %70 = arith.divf %68, %69 : vector<8x1xf32>
    %71 = vector.broadcast %63 : vector<8x1xf32> to vector<8x32xf32>
    %72 = arith.subf %59, %71 : vector<8x32xf32>
    %cst_39 = arith.constant 9.99999974E-6 : f32
    %73 = vector.broadcast %cst_39 : f32 to vector<8x1xf32>
    %74 = arith.addf %70, %73 : vector<8x1xf32>
    %75 = math.rsqrt %74 : vector<8x1xf32>
    %76 = vector.broadcast %75 : vector<8x1xf32> to vector<8x32xf32>
    %77 = arith.mulf %72, %76 : vector<8x32xf32>
    %78 = vector.broadcast %10 : vector<1x32xf32> to vector<8x32xf32>
    %79 = arith.mulf %77, %78 : vector<8x32xf32>
    %80 = vector.broadcast %11 : vector<1x32xf32> to vector<8x32xf32>
    %81 = arith.addf %79, %80 : vector<8x32xf32>
    %cst_40 = arith.constant dense<0.000000e+00> : vector<1x8xf32>
    %82 = tpu.matmul %12, %81, %cst_40 {dimension_numbers = #tpu.dot_dimension_numbers<[1], [1], [0], [0], [0, 0, 1, 0], [], []>} : vector<1x32xf32>, vector<8x32xf32>, vector<1x8xf32> -> vector<1x8xf32>
    %83 = vector.broadcast %13 : vector<1x1xf32> to vector<1x8xf32>
    %84 = arith.addf %82, %83 : vector<1x8xf32>
    %cst_41 = arith.constant 0.000000e+00 : f32
    %85 = vector.broadcast %cst_41 : f32 to vector<1x8xf32>
    %86 = arith.cmpf ogt, %3, %85 : vector<1x8xf32>
    %cst_42 = arith.constant 0.000000e+00 : f32
    %87 = vector.broadcast %cst_42 : f32 to vector<1x8xf32>
    %88 = arith.select %86, %87, %84 : vector<1x8xi1>, vector<1x8xf32>
    %c0_43 = arith.constant 0 : index
    %c0_44 = arith.constant 0 : index
    %c0_45 = arith.constant 0 : index
    %89 = vector.load %arg13[%c0_43, %c0_44, %c0_45] : memref<1x1x8xf32, #tpu.memory_space<vmem>>, vector<1x1x8xf32>
    %90 = vector.shape_cast %89 : vector<1x1x8xf32> to vector<1x8xf32>
    %91 = vector.shape_cast %88 : vector<1x8xf32> to vector<1x1x8xf32>
    tpu.vector_store %arg13[%c0_43, %c0_44, %c0_45], %91 {strides = array<i32>} : memref<1x1x8xf32, #tpu.memory_space<vmem>>, vector<1x1x8xf32>,
    return
  }
  func.func @transform_0(%arg0: i32) -> (i32, i32, i32) {
    %c0_i32 = arith.constant 0 : i32
    %c0_i32_0 = arith.constant 0 : i32
    %c0_i32_1 = arith.constant 0 : i32
    return %arg0, %c0_i32, %c0_i32_0 : i32, i32, i32
  }
  func.func @transform_1(%arg0: i32) -> (i32, i32, i32) {
    %c0_i32 = arith.constant 0 : i32
    %c0_i32_0 = arith.constant 0 : i32
    %c0_i32_1 = arith.constant 0 : i32
    return %arg0, %c0_i32, %c0_i32_0 : i32, i32, i32
  }
  func.func @transform_2(%arg0: i32) -> (i32, i32) {
    %c0_i32 = arith.constant 0 : i32
    %c0_i32_0 = arith.constant 0 : i32
    %c0_i32_1 = arith.constant 0 : i32
    return %c0_i32, %c0_i32_0 : i32, i32
  }
  func.func @transform_3(%arg0: i32) -> (i32, i32) {
    %c0_i32 = arith.constant 0 : i32
    %c0_i32_0 = arith.constant 0 : i32
    %c0_i32_1 = arith.constant 0 : i32
    return %c0_i32, %c0_i32_0 : i32, i32
  }
  func.func @transform_4(%arg0: i32) -> (i32, i32) {
    %c0_i32 = arith.constant 0 : i32
    %c0_i32_0 = arith.constant 0 : i32
    %c0_i32_1 = arith.constant 0 : i32
    return %c0_i32, %c0_i32_0 : i32, i32
  }
  func.func @transform_5(%arg0: i32) -> (i32, i32) {
    %c0_i32 = arith.constant 0 : i32
    %c0_i32_0 = arith.constant 0 : i32
    %c0_i32_1 = arith.constant 0 : i32
    return %c0_i32, %c0_i32_0 : i32, i32
  }
  func.func @transform_6(%arg0: i32) -> (i32, i32) {
    %c0_i32 = arith.constant 0 : i32
    %c0_i32_0 = arith.constant 0 : i32
    %c0_i32_1 = arith.constant 0 : i32
    return %c0_i32, %c0_i32_0 : i32, i32
  }
  func.func @transform_7(%arg0: i32) -> (i32, i32) {
    %c0_i32 = arith.constant 0 : i32
    %c0_i32_0 = arith.constant 0 : i32
    %c0_i32_1 = arith.constant 0 : i32
    return %c0_i32, %c0_i32_0 : i32, i32
  }
  func.func @transform_8(%arg0: i32) -> (i32, i32) {
    %c0_i32 = arith.constant 0 : i32
    %c0_i32_0 = arith.constant 0 : i32
    %c0_i32_1 = arith.constant 0 : i32
    return %c0_i32, %c0_i32_0 : i32, i32
  }
  func.func @transform_9(%arg0: i32) -> (i32, i32) {
    %c0_i32 = arith.constant 0 : i32
    %c0_i32_0 = arith.constant 0 : i32
    %c0_i32_1 = arith.constant 0 : i32
    return %c0_i32, %c0_i32_0 : i32, i32
  }
  func.func @transform_10(%arg0: i32) -> (i32, i32) {
    %c0_i32 = arith.constant 0 : i32
    %c0_i32_0 = arith.constant 0 : i32
    %c0_i32_1 = arith.constant 0 : i32
    return %c0_i32, %c0_i32_0 : i32, i32
  }
  func.func @transform_11(%arg0: i32) -> (i32, i32) {
    %c0_i32 = arith.constant 0 : i32
    %c0_i32_0 = arith.constant 0 : i32
    %c0_i32_1 = arith.constant 0 : i32
    return %c0_i32, %c0_i32_0 : i32, i32
  }
  func.func @transform_12(%arg0: i32) -> (i32, i32, i32) {
    %c0_i32 = arith.constant 0 : i32
    %c0_i32_0 = arith.constant 0 : i32
    %c0_i32_1 = arith.constant 0 : i32
    return %arg0, %c0_i32, %c0_i32_0 : i32, i32, i32
  }
}

</mosaic_0001>

<bundles_post_ra>
// kernel: tpu_custom_call.1
= control target key start
LH: loop header
LB: loop body
LE: loop exit
PB: predicated region body
PF: predicated region fallthrough
CT: control target
= control target key end

     0   :  { %s1391_s0 = inlined_call_operand.vmem [shape: f32[2,8,32], index: 0, kind: input, shape index: {}]   ;;  %s1392_s1 = inlined_call_operand.vmem [shape: f32[2,1,8], index: 1, kind: input, shape index: {}]   ;;  %s1393_s2 = inlined_call_operand.vmem [shape: bf16[96,32], index: 2, kind: input, shape index: {}]   ;;  %s1394_s3 = inlined_call_operand.vmem [shape: f32[1,32], index: 3, kind: input, shape index: {}]   ;;  %s1395_s4 = inlined_call_operand.vmem [shape: f32[1,32], index: 4, kind: input, shape index: {}]   ;;  %s1396_s5 = inlined_call_operand.vmem [shape: f32[1,32], index: 5, kind: input, shape index: {}]   ;;  %s1397_s6 = inlined_call_operand.vmem [shape: bf16[96,32], index: 6, kind: input, shape index: {}]   ;;  %s1398_s7 = inlined_call_operand.vmem [shape: f32[1,32], index: 7, kind: input, shape index: {}]   ;;  %s1399_s8 = inlined_call_operand.vmem [shape: f32[1,32], index: 8, kind: input, shape index: {}]   ;;  %s1400_s9 = inlined_call_operand.vmem [shape: f32[1,32], index: 9, kind: input, shape index: {}]   ;;  %s1401_s10 = inlined_call_operand.vmem [shape: f32[1,32], index: 10, kind: input, shape index: {}]   ;;  %s1402_s11 = inlined_call_operand.<no memory space> [shape: f32[1,1], index: 11, kind: input, shape index: {}]   ;;  %s1403_s12 = inlined_call_operand.hbm [shape: f32[2,1,8], index: 12, kind: output, shape index: {}]  }
   0x1   :  { %1405 = sst [smem:[#allocation6_spill]] %s1391_s0  ;;  %v17_v0 = vstv %s1402_s11 }
   0x2   :  { %18 = vst [vmem:[#allocation2] sm:$0x1] %v17_v0 }
   0x3   :  { %19 = vsyncpa [#allocation4], 0 }
   0x4   :  { %21 = vsyncpa [#allocation4 + $0x1], 0  ;;  %s1184_s23 = smov 0   ;;  %s1186_s24 = smov 0  }
   0x5   :  { %s1188_s25 = smov 0   ;;  %s1190_s26 = smov 0  }
   0x6 LB: > { %s1205_s11 = sadd.s32 4294967295, %s1108_s26   ;;  %s902_s27 = sadd.s32 4294967294, %s1108_s26   ;;  %s1108_s26 = sphi %s1190_s26, %s1413_s26   ;;  %s1104_s25 = sphi %s1188_s25, %s1412_s25   ;;  %s1100_s24 = sphi %s1186_s24, %s1411_s24   ;;  %s1096_s23 = sphi %s1184_s23, %s1410_s23  }
   0x7   : > { %s1209_s28 = sadd.s32 1, %s1108_s26   ;;  %s296_s29 = sadd.s32 1, %s1104_s25 }
   0x8   : > { %s293_s30 = ssub.s32 %s1108_s26, %s1209_s28  ;;  %p306_p0 = scmp.ne.s32.totalorder %s1104_s25, %s1100_s24 }
   0x9   : > { %p294_p1 = scmp.eq.s32.totalorder %s293_s30, 0  ;;  %p307_p2 = scmp.eq.s32.totalorder %s1205_s11, 1 }
   0xa   : > { %p312_p3 = scmp.ne.s32.totalorder %s1100_s24, %s1096_s23  ;;  %p313_p4 = scmp.eq.s32.totalorder %s902_s27, 1 }
   0xb   : > { %s1220_s13 = scalar_select %p294_p1, %s1104_s25, %s296_s29  }
   0xc   : > { %p1222_p5 = por %p307_p2, %p306_p0  ;;  %p1226_p6 = por %p313_p4, %p312_p3 }
   0xd   : > { %p905_p7 = scmp.ge.s32.totalorder %s1108_s26, 1  ;;  %p374_p8 = scmp.lt.s32.totalorder %s1108_s26, 3 }
   0xf   : > { %p375_p9 = pnand %p905_p7, %p374_p8 }
  0x10   : > { %p417_p10 = scmp.lt.s32.totalorder (!%p375_p9), %s1205_s11, 1  ;;  %v1110_v1 = vmov (!%p375_p9), 0.0   ;;  %v1030_v2 = vld [vmem:[%s1393_s2] sm:$0xff] (!%p375_p9)   ;;  %v1031_v3 = vld [vmem:[%s1393_s2 + $0x8] sm:$0xff] (!%p375_p9)   ;;  %s1408_s0 = sld [smem:[#allocation6_spill]] (!%p375_p9)  ;;  %vm462_vm0 = vcmask (!%p375_p9), 1040384  }
  0x11   : > { %378 = sbr.rel (%p375_p9) target bundleno = 1572 (0x624), region = 68  ;;  %948 = vmatprep.subr.bf16.mxu0 (!%p375_p9), %v1110_v1  ;;  %964 = vmatprep.subr.bf16.mxu1 (!%p375_p9), %v1110_v1  ;;  %vm467_vm1 = vcmask (!%p375_p9), 1046528   ;;  %vm474_vm2 = vcmask (!%p375_p9), 1045504   ;;  %v1032_v6 = vld [vmem:[%s1393_s2 + $0x10] sm:$0xff] (!%p375_p9)   ;;  %vm1111_vm3 = vmmov (!%p375_p9), 0   ;;  %v1033_v9 = vld [vmem:[%s1393_s2 + $0x18] sm:$0xff] (!%p375_p9)  }
  0x12   : > { %949 = vmatpush3.bf16.msra.mxu0 (!%p375_p9), %v1030_v2  ;;  %960 = vmatprep.mubr.msk.bf16.mxu0 (!%p375_p9), %vm1111_vm3, %v1110_v1  ;;  %s1404_s20 = smov (!%p375_p9), 32   ;;  %v1034_v16 = vld [vmem:[%s1393_s2 + $0x20] sm:$0xff] (!%p375_p9)   ;;  %s1113_s27 = smov (!%p375_p9), 64   ;;  %v1035_v17 = vld [vmem:[%s1393_s2 + $0x28] sm:$0xff] (!%p375_p9)   ;;  %vm481_vm4 = vcmask (!%p375_p9), 261120   ;;  %vm483_vm5 = vcmask (!%p375_p9), 523264  }
  0x13   : > { %950 = vmatprep.subr.bf16.mxu0 (!%p375_p9), %v1110_v1  ;;  %976 = vmatprep.mubr.msk.bf16.mxu1 (!%p375_p9), %vm1111_vm3, %v1110_v1  ;;  %vm528_vm6 = vcmask (!%p375_p9), 785408   ;;  %v907_v23 = vld [vmem:[%s1394_s3] ss:$0 sm:$0xff] (!%p375_p9)  ;;  %v1037_v37 = vld [vmem:[%s1397_s6 + $0x8] sm:$0xff] (!%p375_p9)   ;;  %v1038_v38 = vld [vmem:[%s1397_s6 + $0x10] sm:$0xff] (!%p375_p9)   ;;  %s1409_s19 = smov (!%p375_p9), 32  }
  0x14   : > { %v1036_v36 = vld [vmem:[%s1397_s6] sm:$0xff] (!%p375_p9)   ;;  %v1039_v39 = vld [vmem:[%s1397_s6 + $0x18] sm:$0xff] (!%p375_p9)   ;;  %v1041_v44 = vld [vmem:[%s1397_s6 + $0x28] sm:$0xff] (!%p375_p9)   ;;  %vm823_vm8 = vcmask (!%p375_p9), 57344  }
  0x15   : > { %965 = vmatpush3.bf16.msra.mxu1 (!%p375_p9), %v1036_v36  ;;  %v1040_v40 = vld [vmem:[%s1397_s6 + $0x20] sm:$0xff] (!%p375_p9)  }
  0x16   : > { %951 = vmatpush3.bf16.msra.mxu0 (!%p375_p9), %v1031_v3  ;;  %966 = vmatprep.subr.bf16.mxu1 (!%p375_p9), %v1110_v1  ;;  %v915_v46 = vld [vmem:[%s1395_s4] ss:$0 sm:$0xff] (!%p375_p9) }
  0x17   : > { %952 = vmatprep.subr.bf16.mxu0 (!%p375_p9), %v1110_v1  ;;  %v916_v48 = vld [vmem:[%s1396_s5] ss:$0 sm:$0xff] (!%p375_p9) }
  0x18   : > { %s1239_s18 = scalar_select %p417_p10, %s1205_s11, 1 }
  0x19   : > { %967 = vmatpush3.bf16.msra.mxu1 %v1037_v37 }
  0x1a   : > { %s906_s21 = sshll.u32 %s1239_s18, 3  ;;  %953 = vmatpush3.bf16.msra.mxu0 %v1032_v6  ;;  %968 = vmatprep.subr.bf16.mxu1 %v1110_v1 }
  0x1b   : > { %s420_s29 = scalar_lea.vmem %s1408_s0, %s906_s21  ;;  %954 = vmatprep.subr.bf16.mxu0 %v1110_v1  ;;  %s1115_s21 = smov [#allocation3]  }
  0x1c   : > { %v425_v4 = vld [vmem:[%s420_s29] sm:$0xff]  ;;  %s929_s29 = sshll.u32 %s1205_s11, 4  ;;  %s1050_s22 = sshll.u32 %s1115_s21, 4  ;;  %s1051_s22 = int_to_ptr.vmem [resolvable:$false] %s1050_s22 }
  0x1d   : > { %v460_v5 = vrot.slane %v425_v4, 7  ;;  %969 = vmatpush3.bf16.msra.mxu1 %v1038_v38  ;;  %s1349_s0 = scalar_lea.hbm %s1403_s12, %s929_s29 }
  0x1e   : > { %955 = vmatpush3.bf16.msra.mxu0 %v1033_v9  ;;  %970 = vmatprep.subr.bf16.mxu1 %v1110_v1 }
  0x1f   : > { %v463_v7 = vsel %vm462_vm0, 0.0, %v460_v5  ;;  %v464_v8 = vsel %vm462_vm0, %v460_v5, 0.0  ;;  %956 = vmatprep.subr.bf16.mxu0 %v1110_v1 }
  0x20   : > { %v468_v10 = vrot.slane %v463_v7, 1  ;;  %v469_v11 = vrot.slane %v464_v8, 1  ;;  %v475_v12 = vrot.slane %v463_v7, 2  ;;  %v476_v13 = vrot.slane %v464_v8, 2 }
  0x21   : > { %971 = vmatpush3.bf16.msra.mxu1 %v1039_v39 }
  0x22   : > { %v470_v14 = vsel %vm467_vm1, %v468_v10, %v469_v11  ;;  %v477_v15 = vsel %vm474_vm2, %v475_v12, %v476_v13  ;;  %957 = vmatpush3.bf16.msra.mxu0 %v1034_v16  ;;  %972 = vmatprep.subr.bf16.mxu1 %v1110_v1 }
  0x23   : > { %471 = vrot.lane.b32.xlu0 %v470_v14, %s1404_s20  ;;  %958 = vmatprep.subr.bf16.mxu0 %v1110_v1  ;;  %v458_v14 = vld [vmem:[#allocation2] sm:$0x1] }
  0x25   : > { %973 = vmatpush3.bf16.msra.mxu1 %v1040_v40 }
  0x26   : > { %959 = vmatpush3.bf16.msra.mxu0 %v1035_v17  ;;  %974 = vmatprep.subr.bf16.mxu1 %v1110_v1 }
  0x27   : > { %478 = vrot.lane.b32.xlu0 %v477_v15, %s1113_s27  ;;  %980 = vmatprep.subr.mxu0 %v1110_v1  ;;  %v1114_v15 = vmov 0  }
  0x28   : > { %1029 = vset.pattern.permute.xlu0 %v1114_v15 }
  0x29   : > { %975 = vmatpush3.bf16.msra.mxu1 %v1041_v44 }
  0x95   : > { %v472_v18 = vpop.permute.xlu0 %471 }
  0x96   : > { %v482_v19 = vsel %vm481_vm4, %v463_v7, %v472_v18 }
  0x99   : > { %v479_v20 = vpop.permute.xlu0 %478 }
  0x9a   : > { %v484_v21 = vsel %vm483_vm5, %v482_v19, %v479_v20  ;;  %v925_v20 = vld [vmem:[%s1399_s8] ss:$0 sm:$0xff] }
  0x9b   : > { %v485_v22 = vpack.c.bf16 %v484_v21, %v484_v21 }
  0x9d   : > { %961 = vmatmul.mubr.msk.bf16.vlgmr.msra.gmra.mrb[0].mxu0 %vm528_vm6, %v485_v22  ;;  %v926_v22 = vld [vmem:[%s1400_s9] ss:$0 sm:$0xff] }
  0x9e   : > { %982 = vmatprep.mubr.msk.f32.mxu0 %vm1111_vm3, %v1110_v1  ;;  %v917_v1 = vld [vmem:[%s1398_s7] ss:$0 sm:$0xff] }
 0x170   : > { %v566_v24 = vpop.f32.mrb[0].mxu0 }
 0x171   : > { %v567_v25 = vadd.f32 %v907_v23, %v566_v24  ;;  %v962_v26 = vpop.f32.mrb[1].mxu0 }
 0x172   : > { %v569_v27 = vpop.f32.mrb[2].mxu0  ;;  %v741_v26 = vlaneseq }
 0x173   : > { %v572_v28 = vmax.f32 %v567_v25, 0.0  ;;  %v963_v29 = vpop.f32.mrb[3].mxu0  ;;  %v457_v25 = vld [vmem:[%s1401_s10] sm:$0x1] }
 0x174   : > { %v742_v27 = vshrl.u32 %v741_v26, 7 }
 0x175   : > { %v573_v30 = vsel %vm481_vm4, %v572_v28, 0.0 }
 0x176   : > { %574 = vadd.xlane.f32.xlu1 %v573_v30 }
 0x203   : > { %v575_v31 = vpop.xlane.xlu1 %574 }
 0x204   : > { %v577_v32 = vmul.f32 0.03125, %v575_v31 }
 0x206   : > { %v578_v33 = vsub.f32 %v572_v28, %v577_v32  ;;  %v743_v28 = vsub.s32 0, %v742_v27 }
 0x208   : > { %v579_v34 = vmul.f32 %v578_v33, %v578_v33 }
 0x20a   : > { %v580_v35 = vsel %vm481_vm4, %v579_v34, 0.0 }
 0x20b   : > { %581 = vadd.xlane.f32.xlu1 %v580_v35 }
 0x298   : > { %v582_v41 = vpop.xlane.xlu1 %581 }
 0x299   : > { %v583_v42 = vmul.f32 0.03125, %v582_v41 }
 0x29b   : > { %v584_v43 = vadd.f32 1e-05, %v583_v42 }
 0x29d   : > { %1042 = vrsqrt.f32 %v584_v43 }
 0x2a7   : > { %v1043_v45 = vpop.eup %1042 }
 0x2a8   : > { %v586_v47 = vmul.f32 %v1043_v45, %v578_v33 }
 0x2aa   : > { %v593_v49 = vmul.f32 %v915_v46, %v586_v47 }
 0x2ac   : > { %v600_v50 = vadd.f32 %v916_v48, %v593_v49 }
 0x2ae   : > { %v602_v51 = vrot.slane %v600_v50, 7 }
 0x2b0   : > { %v604_v52 = vsel %vm462_vm0, 0.0, %v602_v51  ;;  %v605_v53 = vsel %vm462_vm0, %v602_v51, 0.0 }
 0x2b1   : > { %v614_v54 = vrot.slane %v604_v52, 2  ;;  %v615_v55 = vrot.slane %v605_v53, 2  ;;  %v608_v56 = vrot.slane %v604_v52, 1  ;;  %v609_v57 = vrot.slane %v605_v53, 1 }
 0x2b3   : > { %v616_v58 = vsel %vm474_vm2, %v614_v54, %v615_v55  ;;  %v610_v59 = vsel %vm467_vm1, %v608_v56, %v609_v57 }
 0x2b4   : > { %617 = vrot.lane.b32.xlu1 %v616_v58, %s1113_s27  ;;  %611 = vrot.lane.b32.xlu0 %v610_v59, %s1409_s19  ;;  %s415_s19 = sand.u32 1, %s1100_s24   ;;  %s423_s27 = scalar_lea.vmem %s1392_s1, %s1239_s18 }
 0x2b5   : > { %v426_v31 = vld [vmem:[%s423_s27] sm:$0x1]  ;;  %s416_s20 = scalar_lea.vmem [#allocation3], %s415_s19  ;;  %s826_s11 = scalar_lea.sflag [#allocation4], %s415_s19 }
 0x2b6   : > { %s838_s30 = sshll.u32 %s416_s20, 4  ;;  %vm821_vm7 = vcmp.gt.f32.partialorder %v426_v31, 0.0  ;;  %s1052_s27 = scalar_lea.vmem %s1051_s22, 32  ;;  %s1351_s30 = int_to_ptr.vmem [resolvable:$true] %s838_s30 }
 0x2b7   : > { %s1046_s18 = scalar_lea.vmem %s1351_s30, 16  ;;  %p1053_p0 = scmp.lt.s32.totalorder %s1351_s30, %s1051_s22 }
 0x2b8   : > { %p1047_p11 = scmp.ne.s32.totalorder %s1351_s30, %s1046_s18  ;;  %p1054_p1 = scmp.lt.s32.totalorder %s1052_s27, %s1046_s18 }
 0x2ba   : > { %p1048_p12 = pnand %p1047_p11, %p1222_p5  ;;  %p1055_p2 = por %p1054_p1, %p1053_p0 }
 0x2bc   : > { %p1049_p13 = pneg %p1048_p12 }
 0x2be   : > { %p1056_p3 = pnand %p1055_p2, %p1049_p13 }
 0x326   : > { %v618_v60 = vpop.permute.xlu1 %617  ;;  %v612_v61 = vpop.permute.xlu0 %611 }
 0x327   : > { %v620_v62 = vsel %vm481_vm4, %v604_v52, %v612_v61 }
 0x328   : > { %v621_v63 = vsel %vm483_vm5, %v620_v62, %v618_v60 }
 0x329   : > { %v622_v0 = vpack.c.bf16 %v621_v63, %v621_v63 }
 0x32b   : > { %977 = vmatmul.mubr.msk.bf16.vlgmr.msra.gmra.mrb[0].mxu1 %vm528_vm6, %v622_v0 }
 0x3fe   : > { %v702_v2 = vpop.f32.mrb[0].mxu1 }
 0x3ff   : > { %v703_v3 = vadd.f32 %v917_v1, %v702_v2  ;;  %v978_v4 = vpop.f32.mrb[1].mxu1 }
 0x400   : > { %v705_v5 = vpop.f32.mrb[2].mxu1 }
 0x401   : > { %v708_v6 = vmax.f32 %v703_v3, 0.0  ;;  %v979_v7 = vpop.f32.mrb[3].mxu1 }
 0x403   : > { %v709_v8 = vsel %vm481_vm4, %v708_v6, 0.0 }
 0x404   : > { %710 = vadd.xlane.f32.xlu0 %v709_v8 }
 0x41a   : > { %738 = vperm.xlu0 %1029, %v458_v14  }
 0x491   : > { %v711_v9 = vpop.xlane.xlu0 %710 }
 0x492   : > { %v712_v10 = vmul.f32 0.03125, %v711_v9 }
 0x494   : > { %v713_v11 = vsub.f32 %v708_v6, %v712_v10 }
 0x496   : > { %v714_v12 = vmul.f32 %v713_v11, %v713_v11 }
 0x498   : > { %v715_v13 = vsel %vm481_vm4, %v714_v12, 0.0 }
 0x499   : > { %716 = vadd.xlane.f32.xlu1 %v715_v13  ;;  %v739_v29 = vpop.permute.xlu0 %738 }
 0x49a   : > { %v744_v30 = vrot.slane %v739_v29, %v743_v28 }
 0x526   : > { %v717_v16 = vpop.xlane.xlu1 %716 }
 0x527   : > { %v718_v17 = vmul.f32 0.03125, %v717_v16 }
 0x529   : > { %v719_v18 = vadd.f32 1e-05, %v718_v17 }
 0x52b   : > { %1044 = vrsqrt.f32 %v719_v18 }
 0x535   : > { %v1045_v19 = vpop.eup %1044 }
 0x536   : > { %v721_v21 = vmul.f32 %v1045_v19, %v713_v11 }
 0x538   : > { %v728_v23 = vmul.f32 %v925_v20, %v721_v21 }
 0x53a   : > { %v735_v24 = vadd.f32 %v926_v22, %v728_v23 }
 0x53c   : > { %981 = vmatpush3.xpose.msk.msra.mxu0 %vm481_vm4, %v735_v24 }
 0x53f   : > { %983 = vmatmul.mubr.msk.f32.vlgmr.msra.gmra.mrb[4].mxu0 %vm481_vm4, %v457_v25 }
 0x612   : > { %v817_v32 = vpop.f32.mrb[4].mxu0 }
 0x613   : > { %v818_v33 = vadd.f32 %v817_v32, %v744_v30  ;;  %v984_v34 = vpop.f32.mrb[5].mxu0 }
 0x615   : > { %v822_v35 = vsel %vm821_vm7, 0.0, %v818_v33 }
 0x616   : > { %824 = vst.msk [vmem:[%s416_s20] sm:$0x1] %vm823_vm8, %v822_v35 }
 0x617   : > { %1059 = shalt.err (!%p1056_p3)
}
 0x618   : > { %s1060_s19 = scalar_lea.hbm %s1349_s0, 16  ;;  %s1064_s16 = scalar_lea.hbm %s1403_s12, 32 }
 0x619   : > { %p1061_p4 = scmp.ne.s32.totalorder %s1349_s0, %s1060_s19  ;;  %p1065_p9 = scmp.lt.u32.totalorder %s1349_s0, %s1403_s12 }
 0x61a   : > { %p1066_p10 = scmp.lt.u32.totalorder %s1064_s16, %s1060_s19  ;;  %p1068_p12 = scmp.lt.u32.totalorder %s1060_s19, %s1349_s0 }
 0x61b   : > { %p1062_p7 = pnand %p1061_p4, %p1222_p5 }
 0x61c   : > { %p1067_p11 = por %p1066_p10, %p1065_p9 }
 0x61d   : > { %p1063_p8 = pneg %p1062_p7 }
 0x61e   : > { %p1069_p13 = por %p1068_p12, %p1067_p11 }
 0x620   : > { %p1070_p0 = pnand %p1069_p13, %p1063_p8 }
 0x622   : > { %1073 = shalt.err (!%p1070_p0)
}
 0x623   : > { %985 = dma.vmem_to_hbm [thread:$0]  (%p1222_p5), %s1351_s30, 16, %s1349_s0, %s826_s11  }
 0x624 PF: > { %p991_p1 = scmp.ge.s32.totalorder %s1108_s26, 2  ;;  %s850_s18 = sand.u32 1, %s1096_s23  }
 0x625   : > { %s851_s22 = scalar_lea.sflag [#allocation4], %s850_s18 }
 0x626   : > { %p988_p2 = pnand %p991_p1, %p1226_p6 }
 0x628   : > { %1091 = dma.done.wait (!%p988_p2), %s851_s22, 16  }
 0x629   : > { %1093 = vsyncadd (!%p988_p2), %s851_s22, 4294967280  ;;  %p24_p3 = scmp.ge.s32.totalorder %s1209_s28, 4   ;;  %s1410_s23 = smov %s1100_s24 }
 0x62a   : > { %s1411_s24 = smov %s1104_s25  ;;  %s1412_s25 = smov %s1220_s13 }
 0x62b   : > { %s1413_s26 = smov %s1209_s28  ;;  %26 = sbr.rel (!%p24_p3) target bundleno = 6 (0x6), region = 106 }
 0x632   :  { %855 = vsyncpa [#allocation4], 1 }
 0x633   :  { %857 = vsyncpa [#allocation4 + $0x1], 1 }

</bundles_post_ra>
